<compile_context>
chip_gen: v5e
topology: v5e:2x2
jax: 0.10.0
libtpu: 0.0.40
codegen_flags: <defaults>
</compile_context>

<pallas_src>
import functools

import jax
import jax.numpy as jnp
from jax.experimental import pallas as pl
from jax.experimental.pallas import tpu as pltpu


def _focal_loss_kernel(pred_ref, tgt_ref, out_ref, *, gamma, ignore_index, n_rows):
    t = pred_ref.shape[0]
    x = pred_ref[...]                                   # (T, C) native dtype
    tgt = tgt_ref[...]                                  # (T, 1) int32

    # valid = real row (not OOB of the partial last block) and not ignored.
    row_idx = pl.program_id(0) * t + jax.lax.broadcasted_iota(jnp.int32, (t, 1), 0)
    valid = (tgt != ignore_index) & (row_idx < n_rows)  # (T, 1) bool

    # Row max and the one-hot gather of logits[i, target[i]] stay in the input
    # dtype (both are exact); only the exp / log-sum-exp path is f32.
    row_max = jnp.max(x, axis=-1, keepdims=True)                       # (T, 1)
    col = jax.lax.broadcasted_iota(jnp.int32, x.shape, 1)              # (T, C)
    onehot = col == tgt                                                # (T, C)
    x_t = jnp.sum(jnp.where(onehot, x, jnp.zeros_like(x)),
                  axis=-1, keepdims=True)                              # (T, 1)

    row_max_f = row_max.astype(jnp.float32)
    shifted = x.astype(jnp.float32) - row_max_f                        # (T, C) f32
    sum_exp = jnp.sum(jnp.exp(shifted), axis=-1, keepdims=True)        # (T, 1)

    logpt = (x_t.astype(jnp.float32) - row_max_f) - jnp.log(sum_exp)   # (T, 1)
    logpt = jnp.minimum(logpt, 0.0)          # fp-rounding guard -> 1 - pt >= 0
    pt = jnp.exp(logpt)
    one_m_pt = 1.0 - pt

    if float(gamma) == int(gamma):
        w = jax.lax.integer_pow(one_m_pt, int(gamma))   # VPU muls, no EUP pow
    else:
        w = jnp.power(jnp.maximum(one_m_pt, 0.0), gamma)

    focal = -w * logpt                                   # (T, 1)
    focal = jnp.where(valid, focal, 0.0)                 # drop ignored / OOB rows

    # One partial sum per tile into a lane-dense (1, 8, 128) slab.
    tile_sum = jnp.sum(focal)
    out_ref[...] = jnp.full(out_ref.shape, tile_sum, dtype=jnp.float32)


def focal_loss(logits, targets, *, gamma=2, weight=None, ignore_index=-100,
               tile_rows=None):
    """Pallas TPU forward of bert4torch FocalLoss.

    logits: [N, C] (any float dtype), targets: [N] integer class ids.
    Returns a scalar f32 loss (mean over non-ignored rows; NaN if none,
    matching PyTorch's mean-reduction behavior).
    """
    # TODO(synk): per-class `weight` (F.nll_loss weight=) is not implemented.
    assert weight is None, "per-class weight not supported"
    assert logits.ndim == 2 and targets.ndim == 1
    n, c = logits.shape

    targets = targets.astype(jnp.int32)
    num_valid = jnp.sum((targets != ignore_index).astype(jnp.float32))
    tgt2d = targets.reshape(n, 1)

    itemsize = jnp.dtype(logits.dtype).itemsize

    # Generation-aware VMEM budget: v7x has 64 MiB/TC, v5e/v6e have 128 MiB.
    try:
        info = pltpu.get_tpu_info()
        vmem_cap = int(getattr(info, "vmem_capacity_bytes", 64 * 1024 * 1024))
    except Exception:
        vmem_cap = 64 * 1024 * 1024
    vmem_limit = min((vmem_cap * 3) // 4, 96 * 1024 * 1024)   # ~48 MiB v7x, 96 MiB v5e/v6e

    if tile_rows is None:
        # Full per-row working set (not just raw input bytes):
        #   2 x double-buffered input tile rows            : 2 * C * itemsize
        #   2 x double-buffered target rows (lane-padded)  : 2 * 512
        #   ~3 live f32 (T, C) intermediates               : 3 * C * 4
        # TODO(synk): for tiny C, ship targets lane-dense instead of a 1-wide
        # column to cut the 512 B/row padded DMA traffic further.
        bytes_per_row = 2 * c * itemsize + 2 * 512 + 3 * c * 4
        budget = max(vmem_limit - 4 * 1024 * 1024, 2 * 1024 * 1024)
        tile_rows = budget // bytes_per_row

    # Keep >= 2 grid steps when possible (v7x: 2 TensorCores on a "parallel"
    # axis; neutral on v5e/v6e), and respect the 8-row sublane multiple.
    half_rows = -(-(-(-n // 2)) // 8) * 8          # round_up(ceil(n/2), 8)
    tile_rows = min(tile_rows, half_rows)
    tile_rows = max(8, (tile_rows // 8) * 8)

    n_tiles = pl.cdiv(n, tile_rows)

    kernel = functools.partial(_focal_loss_kernel, gamma=gamma,
                               ignore_index=ignore_index, n_rows=n)

    partial = pl.pallas_call(
        kernel,
        out_shape=jax.ShapeDtypeStruct((n_tiles, 8, 128), jnp.float32),
        grid_spec=pltpu.PrefetchScalarGridSpec(
            num_scalar_prefetch=0,
            grid=(n_tiles,),
            in_specs=[
                pl.BlockSpec((tile_rows, c), lambda i: (i, 0)),
                pl.BlockSpec((tile_rows, 1), lambda i: (i, 0)),
            ],
            out_specs=pl.BlockSpec((1, 8, 128), lambda i: (i, 0, 0)),
        ),
        compiler_params=pltpu.CompilerParams(
            dimension_semantics=("parallel",),
            vmem_limit_bytes=int(vmem_limit),
        ),
    )(logits, tgt2d)

    total = jnp.sum(partial[:, 0, 0])
    return total / num_valid


def _reference(logits, targets, *, gamma=2, ignore_index=-100):
    # Pure-JAX mirror of the PyTorch forward (weight=None).
    logpt = jax.nn.log_softmax(logits.astype(jnp.float32), axis=1)
    pt = jnp.exp(logpt)
    logpt = (1.0 - pt) ** gamma * logpt
    valid = targets != ignore_index
    safe_t = jnp.where(valid, targets, 0)
    picked = jnp.take_along_axis(logpt, safe_t[:, None], axis=1)[:, 0]
    per_row = -jnp.where(valid, picked, 0.0)
    return jnp.sum(per_row) / jnp.sum(valid.astype(jnp.float32))


if __name__ == "__main__":
    key = jax.random.PRNGKey(0)
    k_x, k_t, k_m = jax.random.split(key, 3)

    n, c = 50, 32                       # input [N, C], target [N]
    logits = jax.random.normal(k_x, (n, c), dtype=jnp.float32) * 3.0
    targets = jax.random.randint(k_t, (n,), 0, c, dtype=jnp.int32)
    # sprinkle some ignored rows to exercise ignore_index masking
    ignore_mask = jax.random.bernoulli(k_m, 0.2, (n,))
    targets = jnp.where(ignore_mask, -100, targets)

    # multi-tile path (forces a partial last block + in-kernel tail masking) ...
    loss_tiled = jax.block_until_ready(focal_loss(logits, targets, tile_rows=16))
    # ... and the default auto-sized path (>= 2 tiles, no host-side padding).
    loss_auto = jax.block_until_ready(focal_loss(logits, targets))

    ref = jax.block_until_ready(_reference(logits, targets))
    assert jnp.allclose(loss_tiled, ref, rtol=1e-5, atol=1e-5), (loss_tiled, ref)
    assert jnp.allclose(loss_auto, ref, rtol=1e-5, atol=1e-5), (loss_auto, ref)

    print("KERNEL_OK")
</pallas_src>

<mosaic_0001>
module attributes {stable_mosaic.version = 11 : i64} {
  func.func @_focal_loss_kernel(%arg0: i32, %arg1: memref<16x32xf32, #tpu.memory_space<vmem>>, %arg2: memref<16x1xi32, #tpu.memory_space<vmem>>, %arg3: memref<1x8x128xf32, #tpu.memory_space<vmem>>) attributes {dimension_semantics = [#tpu.dimension_semantics<parallel>], iteration_bounds = array<i64: 4>, scalar_prefetch = 0 : i64, scratch_operands = 0 : i64, tpu.core_type = #tpu.core_type<tc>, window_params = [{transform_indices = @transform_0, window_bounds = array<i64: 16, 32>}, {transform_indices = @transform_1, window_bounds = array<i64: 16, 1>}, {transform_indices = @transform_2, window_bounds = array<i64: 1, 8, 128>}]} {
    %c0 = arith.constant 0 : index
    %c0_0 = arith.constant 0 : index
    %0 = vector.load %arg1[%c0, %c0_0] : memref<16x32xf32, #tpu.memory_space<vmem>>, vector<16x32xf32>
    %c0_1 = arith.constant 0 : index
    %c0_2 = arith.constant 0 : index
    %1 = vector.load %arg2[%c0_1, %c0_2] : memref<16x1xi32, #tpu.memory_space<vmem>>, vector<16x1xi32>
    %c16_i32 = arith.constant 16 : i32
    %2 = arith.muli %arg0, %c16_i32 : i32
    %3 = tpu.iota {dimensions = array<i32: 0>} : vector<16x1xi32>
    %4 = vector.broadcast %2 : i32 to vector<16x1xi32>
    %5 = arith.addi %4, %3 : vector<16x1xi32>
    %c-100_i32 = arith.constant -100 : i32
    %6 = vector.broadcast %c-100_i32 : i32 to vector<16x1xi32>
    %7 = arith.cmpi ne, %1, %6 : vector<16x1xi32>
    %c50_i32 = arith.constant 50 : i32
    %8 = vector.broadcast %c50_i32 : i32 to vector<16x1xi32>
    %9 = arith.cmpi slt, %5, %8 : vector<16x1xi32>
    %10 = arith.andi %7, %9 : vector<16x1xi1>
    %cst = arith.constant dense<0xFF800000> : vector<16xf32>
    %11 = vector.multi_reduction <maximumf>, %0, %cst [1] : vector<16x32xf32> to vector<16xf32>
    %12 = vector.shape_cast %11 : vector<16xf32> to vector<16x1xf32>
    %13 = tpu.iota {dimensions = array<i32: 1>} : vector<16x32xi32>
    %14 = vector.broadcast %1 : vector<16x1xi32> to vector<16x32xi32>
    %15 = arith.cmpi eq, %13, %14 : vector<16x32xi32>
    %cst_3 = arith.constant 0.000000e+00 : f32
    %16 = vector.broadcast %cst_3 : f32 to vector<16x32xf32>
    %17 = arith.select %15, %0, %16 : vector<16x32xi1>, vector<16x32xf32>
    %cst_4 = arith.constant dense<0.000000e+00> : vector<16xf32>
    %18 = vector.multi_reduction <add>, %17, %cst_4 [1] : vector<16x32xf32> to vector<16xf32>
    %19 = vector.shape_cast %18 : vector<16xf32> to vector<16x1xf32>
    %20 = vector.broadcast %12 : vector<16x1xf32> to vector<16x32xf32>
    %21 = arith.subf %0, %20 : vector<16x32xf32>
    %22 = math.exp %21 : vector<16x32xf32>
    %cst_5 = arith.constant dense<0.000000e+00> : vector<16xf32>
    %23 = vector.multi_reduction <add>, %22, %cst_5 [1] : vector<16x32xf32> to vector<16xf32>
    %24 = vector.shape_cast %23 : vector<16xf32> to vector<16x1xf32>
    %25 = arith.subf %19, %12 : vector<16x1xf32>
    %26 = math.log %24 : vector<16x1xf32>
    %27 = arith.subf %25, %26 : vector<16x1xf32>
    %cst_6 = arith.constant 0.000000e+00 : f32
    %28 = vector.broadcast %cst_6 : f32 to vector<16x1xf32>
    %29 = arith.minimumf %27, %28 : vector<16x1xf32>
    %30 = math.exp %29 : vector<16x1xf32>
    %cst_7 = arith.constant 1.000000e+00 : f32
    %31 = vector.broadcast %cst_7 : f32 to vector<16x1xf32>
    %32 = arith.subf %31, %30 : vector<16x1xf32>
    %33 = arith.mulf %32, %32 : vector<16x1xf32>
    %cst_8 = arith.constant 0.000000e+00 : f32
    %34 = vector.broadcast %cst_8 : f32 to vector<16x1xf32>
    %35 = arith.subf %34, %33 : vector<16x1xf32>
    %36 = arith.mulf %35, %29 : vector<16x1xf32>
    %cst_9 = arith.constant 0.000000e+00 : f32
    %37 = vector.broadcast %cst_9 : f32 to vector<16x1xf32>
    %38 = arith.select %10, %36, %37 : vector<16x1xi1>, vector<16x1xf32>
    %39 = vector.shape_cast %38 : vector<16x1xf32> to vector<1x16x1xf32>
    %cst_10 = arith.constant dense<0.000000e+00> : vector<1xf32>
    %40 = vector.multi_reduction <add>, %39, %cst_10 [1, 2] : vector<1x16x1xf32> to vector<1xf32>
    %41 = vector.shape_cast %40 : vector<1xf32> to vector<1x1x1xf32>
    %42 = vector.extract %41[0, 0, 0] : f32 from vector<1x1x1xf32>
    %43 = vector.broadcast %42 : f32 to vector<1x8x128xf32>
    %c0_11 = arith.constant 0 : index
    %c0_12 = arith.constant 0 : index
    %c0_13 = arith.constant 0 : index
    %44 = vector.load %arg3[%c0_11, %c0_12, %c0_13] : memref<1x8x128xf32, #tpu.memory_space<vmem>>, vector<1x8x128xf32>
    tpu.vector_store %arg3[%c0_11, %c0_12, %c0_13], %43 {strides = array<i32>} : memref<1x8x128xf32, #tpu.memory_space<vmem>>, vector<1x8x128xf32>,
    return
  }
  func.func @transform_0(%arg0: i32) -> (i32, i32) {
    %c0_i32 = arith.constant 0 : i32
    %c0_i32_0 = arith.constant 0 : i32
    return %arg0, %c0_i32 : i32, i32
  }
  func.func @transform_1(%arg0: i32) -> (i32, i32) {
    %c0_i32 = arith.constant 0 : i32
    %c0_i32_0 = arith.constant 0 : i32
    return %arg0, %c0_i32 : i32, i32
  }
  func.func @transform_2(%arg0: i32) -> (i32, i32, i32) {
    %c0_i32 = arith.constant 0 : i32
    %c0_i32_0 = arith.constant 0 : i32
    %c0_i32_1 = arith.constant 0 : i32
    return %arg0, %c0_i32, %c0_i32_0 : i32, i32, i32
  }
}

</mosaic_0001>

<bundles_post_ra>
// kernel: tpu_custom_call.1
= control target key start
LH: loop header
LB: loop body
LE: loop exit
PB: predicated region body
PF: predicated region fallthrough
CT: control target
= control target key end

     0   :  { %7 = vsyncpa [#allocation3], 0  ;;  %s642_s0 = inlined_call_operand.vmem [shape: f32[50,32], index: 0, kind: input, shape index: {}]   ;;  %s643_s1 = inlined_call_operand.vmem [shape: s32[50,1], index: 1, kind: input, shape index: {}]   ;;  %s644_s2 = inlined_call_operand.hbm [shape: f32[4,8,128], index: 2, kind: output, shape index: {}]  }
   0x1   :  { %9 = vsyncpa [#allocation3 + $0x1], 0  ;;  %s536_s9 = smov 0   ;;  %s538_s10 = smov 0  }
   0x2   :  { %s540_s11 = smov 0   ;;  %s542_s12 = smov 0  }
   0x3 LB: > { %s557_s13 = sadd.s32 4294967295, %s518_s12   ;;  %s386_s14 = sadd.s32 4294967294, %s518_s12   ;;  %s518_s12 = sphi %s542_s12, %s654_s12   ;;  %s514_s11 = sphi %s540_s11, %s653_s11   ;;  %s510_s10 = sphi %s538_s10, %s652_s10   ;;  %s506_s9 = sphi %s536_s9, %s651_s9  }
   0x4   : > { %s561_s15 = sadd.s32 1, %s518_s12   ;;  %s74_s16 = sadd.s32 1, %s514_s11 }
   0x5   : > { %s71_s17 = ssub.s32 %s518_s12, %s561_s15  ;;  %p84_p0 = scmp.ne.s32.totalorder %s514_s11, %s510_s10 }
   0x6   : > { %p72_p1 = scmp.eq.s32.totalorder %s71_s17, 0  ;;  %p85_p2 = scmp.eq.s32.totalorder %s557_s13, 3 }
   0x7   : > { %p90_p3 = scmp.ne.s32.totalorder %s510_s10, %s506_s9  ;;  %p91_p4 = scmp.eq.s32.totalorder %s386_s14, 3 }
   0x8   : > { %s572_s18 = scalar_select %p72_p1, %s514_s11, %s74_s16  }
   0x9   : > { %p574_p5 = por %p85_p2, %p84_p0  ;;  %p578_p6 = por %p91_p4, %p90_p3 }
   0xa   : > { %p389_p7 = scmp.ge.s32.totalorder %s518_s12, 1  ;;  %p143_p8 = scmp.lt.s32.totalorder %s518_s12, 5 }
   0xc   : > { %p144_p9 = pnand %p389_p7, %p143_p8 }
   0xd   : > { %s391_s21 = sshll.u32 (!%p144_p9), %s557_s13, 1  ;;  %s395_s22 = sshll.u32 (!%p144_p9), %s557_s13, 4 }
   0xe   : > { %147 = sbr.rel (%p144_p9) target bundleno = 493 (0x1ed), region = 28  ;;  %p183_p10 = scmp.lt.s32.totalorder (!%p144_p9), %s391_s21, 6 }
   0xf   : > { %s175_s30 = sand.u32 (!%p144_p9), 1, %s510_s10   ;;  %s397_s4 = sshll.u32 (!%p144_p9), %s557_s13, 3 }
  0x10   : > { %s390_s3 = sshll.u32 (!%p144_p9), %s175_s30, 3  ;;  %s310_s7 = scalar_lea.hbm (!%p144_p9), %s644_s2, %s397_s4 }
  0x11   : > { %s177_s8 = scalar_lea.vmem (!%p144_p9), [#allocation2], %s390_s3  ;;  %s314_s16 = sshll.u32 (!%p144_p9), %s310_s7, 4  ;;  %s315_s16 = int_to_ptr.hbm [resolvable:$true] %s314_s16 }
  0x12   : > { %s312_s14 = sshll.u32 (!%p144_p9), %s177_s8, 4  ;;  %s476_s25 = scalar_lea.hbm (!%p144_p9), %s644_s2, 32  ;;  %s313_s14 = int_to_ptr.vmem [resolvable:$true] %s312_s14 }
  0x13   : > { %v211_v0 = vlaneseq  ;;  %v520_v1 = vmov 0   ;;  %v214_v2 = vstv %s395_s22  ;;  %s656_s21 = smov (!%p183_p10, %s391_s21), 6  ;;  %vm223_vm0 = vcmask 261120   ;;  %s470_s22 = sshra.s32 %s315_s16, 4  ;;  %s471_s22 = int_to_ptr.hbm [resolvable:$true] %s470_s22 }
  0x14   : > { %442 = vset.pattern.permute.xlu1 %v520_v1  ;;  %443 = vset.pattern.permute.xlu0 %v520_v1  ;;  %s392_s23 = sshll.u32 %s656_s21, 3  ;;  %vm284_vm9 = vcmask 7168   ;;  %s300_s21 = scalar_lea.sflag [#allocation3], %s175_s30 }
  0x15   : > { %v212_v3 = vshrl.u32 %v211_v0, 7  ;;  %s200_s26 = scalar_lea.vmem %s643_s1, %s392_s23  ;;  %s186_s29 = scalar_lea.vmem %s642_s0, %s392_s23  ;;  %v231_v15 = vand.u32 127, %v211_v0 }
  0x16   : > { %v208_v7 = vld [vmem:[%s200_s26] sm:$0xff]  ;;  %v209_v9 = vld [vmem:[%s200_s26 + $0x8] sm:$0xff]  ;;  %s472_s23 = scalar_lea.hbm %s471_s22, 8  ;;  %p477_p0 = scmp.lt.s32.totalorder %s471_s22, %s644_s2 }
  0x17   : > { %v215_v4 = vadd.s32 %v214_v2, %v212_v3  ;;  %v213_v5 = vadd.s32 8, %v212_v3  ;;  %v206_v8 = vld [vmem:[%s186_s29] sm:$0xff]  ;;  %233 = vperm.xlu1 %442, %v208_v7   ;;  %vm217_vm2 = vcmp.ne.s32.totalorder %v208_v7, 4294967196  ;;  %vm218_vm3 = vcmp.ne.s32.totalorder %v209_v9, 4294967196  ;;  %v207_v13 = vld [vmem:[%s186_s29 + $0x8] sm:$0xff]  ;;  %p473_p11 = scmp.ne.s32.totalorder %s471_s22, %s472_s23  ;;  %p478_p1 = scmp.lt.s32.totalorder %s476_s25, %s472_s23 }
  0x18   : > { %v224_v10 = vsel %vm223_vm0, %v206_v8, -inf  ;;  %v227_v14 = vsel %vm223_vm0, %v207_v13, -inf }
  0x19   : > { %vm219_vm1 = vcmp.lt.s32.totalorder %v215_v4, 50  ;;  %v216_v6 = vadd.s32 %v214_v2, %v213_v5  ;;  %225 = vmax.xlane.f32.xlu0 %v224_v10  ;;  %p474_p12 = pnand %p473_p11, %p574_p5  ;;  %p479_p2 = por %p478_p1, %p477_p0 }
  0x1a   : > { %vm593_vm5 = vmand %vm217_vm2, %vm219_vm1 }
  0x1b   : > { %vm220_vm4 = vcmp.lt.s32.totalorder %v216_v6, 50  ;;  %p475_p13 = pneg %p474_p12 }
  0x1c   : > { %vm597_vm6 = vmand %vm218_vm3, %vm220_vm4 }
  0x1d   : > { %p480_p3 = pnand %p479_p2, %p475_p13 }
  0x1f   : > { %236 = vperm.xlu1 %442, %v209_v9  }
  0x21   : > { %228 = vmax.xlane.f32.xlu0 %v227_v14 }
  0x89   : > { %v234_v16 = vpop.permute.xlu1 %233 }
  0x8a   : > { %vm238_vm7 = vcmp.eq.s32.totalorder %v231_v15, %v234_v16 }
  0x8b   : > { %v240_v18 = vsel %vm238_vm7, %v206_v8, 0.0 }
  0x8c   : > { %v226_v17 = vpop.xlane.xlu0 %225  ;;  %v242_v20 = vsel %vm223_vm0, %v240_v18, 0.0 }
  0x8d   : > { %v248_v19 = vsub.f32 %v206_v8, %v226_v17  ;;  %243 = vadd.xlane.f32.xlu0 %v242_v20 }
  0x8f   : > { %v250_v21 = vmul.f32 1.442695, %v248_v19 }
  0x91   : > { %444 = vpow2.f32 %v250_v21  ;;  %v237_v22 = vpop.permute.xlu1 %236 }
  0x92   : > { %vm239_vm8 = vcmp.eq.s32.totalorder %v231_v15, %v237_v22 }
  0x93   : > { %v241_v24 = vsel %vm239_vm8, %v207_v13, 0.0 }
  0x94   : > { %v229_v23 = vpop.xlane.xlu0 %228  ;;  %v245_v26 = vsel %vm223_vm0, %v241_v24, 0.0 }
  0x95   : > { %v249_v25 = vsub.f32 %v207_v13, %v229_v23  ;;  %246 = vadd.xlane.f32.xlu1 %v245_v26 }
  0x97   : > { %v445_v27 = vpop.eup %444  ;;  %v252_v28 = vmul.f32 1.442695, %v249_v25 }
  0x98   : > { %v254_v29 = vsel %vm223_vm0, %v445_v27, 0.0 }
  0x99   : > { %446 = vpow2.f32 %v252_v28  ;;  %255 = vadd.xlane.f32.xlu2 %v254_v29 }
  0x9f   : > { %v447_v30 = vpop.eup %446 }
  0xa0   : > { %v257_v31 = vsel %vm223_vm0, %v447_v30, 0.0 }
  0xa1   : > { %258 = vadd.xlane.f32.xlu2 %v257_v31 }
 0x100   : > { %v244_v33 = vpop.xlane.xlu0 %243 }
 0x101   : > { %v260_v35 = vsub.f32 %v244_v33, %v226_v17 }
 0x108   : > { %v247_v40 = vpop.xlane.xlu1 %246 }
 0x109   : > { %v261_v43 = vsub.f32 %v247_v40, %v229_v23 }
 0x10c   : > { %v256_v32 = vpop.xlane.xlu2 %255 }
 0x10d   : > { %448 = vlog2.f32 %v256_v32 }
 0x113   : > { %v449_v34 = vpop.eup %448 }
 0x114   : > { %v263_v36 = vmul.f32 0.6931472, %v449_v34  ;;  %v259_v37 = vpop.xlane.xlu2 %258 }
 0x115   : > { %450 = vlog2.f32 %v259_v37 }
 0x116   : > { %v266_v38 = vsub.f32 %v260_v35, %v263_v36 }
 0x118   : > { %v268_v39 = vmin.f32 %v266_v38, 0.0 }
 0x11a   : > { %v270_v41 = vmul.f32 1.442695, %v268_v39 }
 0x11b   : > { %v451_v42 = vpop.eup %450 }
 0x11c   : > { %452 = vpow2.f32 %v270_v41  ;;  %v265_v44 = vmul.f32 0.6931472, %v451_v42 }
 0x11e   : > { %v267_v45 = vsub.f32 %v261_v43, %v265_v44 }
 0x120   : > { %v269_v46 = vmin.f32 %v267_v45, 0.0 }
 0x122   : > { %v453_v47 = vpop.eup %452  ;;  %v272_v48 = vmul.f32 1.442695, %v269_v46 }
 0x123   : > { %v274_v49 = vsub.f32 1.0, %v453_v47 }
 0x124   : > { %454 = vpow2.f32 %v272_v48 }
 0x125   : > { %v276_v50 = vmul.f32 %v274_v49, %v274_v49 }
 0x127   : > { %v278_v51 = vsub.f32 0.0, %v276_v50 }
 0x129   : > { %v280_v55 = vmul.f32 %v278_v51, %v268_v39 }
 0x12a   : > { %v455_v52 = vpop.eup %454 }
 0x12b   : > { %v275_v53 = vsub.f32 1.0, %v455_v52  ;;  %v282_v58 = vsel %vm593_vm5, %v280_v55, 0.0 }
 0x12c   : > { %v285_v60 = vsel %vm284_vm9, %v282_v58, 0.0 }
 0x12d   : > { %v277_v54 = vmul.f32 %v275_v53, %v275_v53 }
 0x12f   : > { %v279_v56 = vsub.f32 0.0, %v277_v54 }
 0x131   : > { %v281_v57 = vmul.f32 %v279_v56, %v269_v46 }
 0x133   : > { %v283_v59 = vsel %vm597_vm6, %v281_v57, 0.0 }
 0x134   : > { %v286_v61 = vsel %vm284_vm9, %v283_v59, 0.0 }
 0x135   : > { %v287_v62 = vadd.f32 %v286_v61, %v285_v60 }
 0x137   : > { %288 = vadd.xlane.f32.xlu2 %v287_v62 }
 0x1aa   : > { %v289_v63 = vpop.xlane.xlu2 %288 }
 0x1ab   : > { %v290_v0 = vrot.slane %v289_v63, 4 }
 0x1ad   : > { %v291_v1 = vadd.f32 %v290_v0, %v289_v63 }
 0x1af   : > { %v292_v2 = vrot.slane %v291_v1, 2 }
 0x1b1   : > { %v293_v3 = vadd.f32 %v292_v2, %v291_v1 }
 0x1b3   : > { %v294_v4 = vrot.slane %v293_v3, 1 }
 0x1b5   : > { %v295_v5 = vadd.f32 %v294_v4, %v293_v3 }
 0x1b7   : > { %400 = vpush %v295_v5 }
 0x1e8   : > { %s401_s17 = spop %400 }
 0x1e9   : > { %v297_v6 = vstv %s401_s17 }
 0x1ea   : > { %298 = vst [vmem:[%s177_s8] sm:$0xff] %v297_v6 }
 0x1eb   : > { %483 = shalt.err (!%p480_p3)
}
 0x1ec   : > { %402 = dma.vmem_to_hbm [thread:$0]  (%p574_p5), %s313_s14, 128, %s315_s16, %s300_s21  }
 0x1ed PF: > { %p408_p4 = scmp.ge.s32.totalorder %s518_s12, 2  ;;  %s326_s28 = sand.u32 1, %s506_s9  }
 0x1ee   : > { %s327_s29 = scalar_lea.sflag [#allocation3], %s326_s28 }
 0x1ef   : > { %p405_p7 = pnand %p408_p4, %p578_p6 }
 0x1f1   : > { %p406_p8 = pneg %p405_p7 }
 0x1f3   : > { %501 = dma.done.wait (%p406_p8), %s327_s29, 128  }
 0x1f4   : > { %503 = vsyncadd (%p406_p8), %s327_s29, 4294967168  ;;  %p12_p9 = scmp.ge.s32.totalorder %s561_s15, 6   ;;  %s651_s9 = smov %s510_s10 }
 0x1f5   : > { %s652_s10 = smov %s514_s11  ;;  %s653_s11 = smov %s572_s18 }
 0x1f6   : > { %s654_s12 = smov %s561_s15  ;;  %14 = sbr.rel (!%p12_p9) target bundleno = 3 (0x3), region = 66 }
 0x1fb   :  { %333 = vsyncpa [#allocation3], 1 }
 0x1fc   :  { %335 = vsyncpa [#allocation3 + $0x1], 1 }

</bundles_post_ra>
